<compile_context>
chip_gen: v5e
topology: v5e:2x2
jax: 0.10.0
libtpu: 0.0.40
codegen_flags: <defaults>
</compile_context>

<pallas_src>
import jax
import jax.numpy as jnp
from jax.experimental import pallas as pl
from jax.experimental.pallas import tpu as pltpu

IN_FEATURES = 1024
OUT_FEATURES = 2
_LANE = 128
_SUBLANE = 8


def _round_up(n, m):
    return ((n + m - 1) // m) * m


def _device_kind():
    try:
        return jax.devices()[0].device_kind.lower()
    except Exception:  # pragma: no cover - defensive, e.g. no devices yet
        return ""


def _default_block_b():
    kind = _device_kind()
    # v5e (~0.8 TB/s) is already ~93% of the HBM roofline at 1024 rows.
    # v6e (~1.4 TB/s) and v7x (~3.2 TB/s) want ~2048 rows to amortize the
    # ~0.35 us fixed per-grid-step overhead.
    if "v5e" in kind or "v5 lite" in kind or "v5lite" in kind:
        return 1024
    return 2048


def _batch_dim_semantics():
    kind = _device_kind()
    # Only CORE_PARALLEL actually shards a grid axis across v7x's two
    # TensorCores; on single-TC chips (v5e/v6e) "parallel" is a safe no-op.
    if "v7" in kind or "tpu7" in kind:
        return (pltpu.CORE_PARALLEL,)
    return ("parallel",)


def _classification_kernel(x_ref, w_ref, b_ref, o_ref):
    # x_ref: (TB, 1024), w_ref: (1024, 2), b_ref: (1, 2), o_ref: (TB, 2)
    logits = (
        jnp.dot(x_ref[...], w_ref[...], preferred_element_type=jnp.float32)
        + b_ref[...]
    )
    # Numerically stable softmax over the class axis (torch dim=1).
    m = jnp.max(logits, axis=-1, keepdims=True)
    e = jnp.exp(logits - m)
    o_ref[...] = (e / jnp.sum(e, axis=-1, keepdims=True)).astype(o_ref.dtype)


def classification_forward(x, w_t, b, *, block_b=None):
    """x: (B, 1024) f32, w_t: (1024, 2) f32, b: (2,) f32 -> (B, 2) f32."""
    B, F = x.shape
    assert F == IN_FEATURES, f"expected {IN_FEATURES} features, got {F}"
    if block_b is None:
        block_b = _default_block_b()

    # Batch tile: multiple of 8 sublanes, capped at block_b.  No wrapper-side
    # padding: the grid uses cdiv and Pallas masks the ragged last block.
    TB = min(_round_up(block_b, _SUBLANE), _round_up(B, _SUBLANE))
    num_tiles = pl.cdiv(B, TB)

    b2d = b.reshape(1, OUT_FEATURES)

    x_index = lambda i: (i, 0)
    if num_tiles >= 3:
        # Deeper buffering on the only streamed input smooths DMA jitter when
        # per-tile DMA time is short (esp. v7x).
        x_spec = pl.BlockSpec(
            (TB, IN_FEATURES), x_index, pipeline_mode=pl.Buffered(3)
        )
        n_x_bufs = 3
    else:
        x_spec = pl.BlockSpec((TB, IN_FEATURES), x_index)
        n_x_bufs = 2

    # VMEM budget: multi-buffered x tile + lane-padded weight / bias / output.
    # Capped at 56 MiB so it also fits v7x's 64 MiB physical VMEM.
    vmem_bytes = (
        n_x_bufs * TB * IN_FEATURES * 4   # streamed x tiles
        + 2 * IN_FEATURES * _LANE * 4     # (1024, 2) weight, padded to 128 lanes
        + 2 * _SUBLANE * _LANE * 4        # bias tile (padded)
        + 2 * TB * _LANE * 4              # output tile (padded to 128 lanes)
    )
    vmem_bytes = int(vmem_bytes * 1.25) + (2 << 20)
    vmem_bytes = min(max(vmem_bytes, 16 << 20), 56 << 20)

    cost = pl.CostEstimate(
        flops=2 * B * IN_FEATURES * OUT_FEATURES,
        transcendentals=B * OUT_FEATURES,
        bytes_accessed=(
            B * IN_FEATURES * 4
            + IN_FEATURES * OUT_FEATURES * 4
            + B * OUT_FEATURES * 4
        ),
    )

    return pl.pallas_call(
        _classification_kernel,
        out_shape=jax.ShapeDtypeStruct((B, OUT_FEATURES), jnp.float32),
        grid=(num_tiles,),
        in_specs=[
            x_spec,
            # Constant block index -> weight/bias fetched once, resident in VMEM.
            pl.BlockSpec((IN_FEATURES, OUT_FEATURES), lambda i: (0, 0)),
            pl.BlockSpec((1, OUT_FEATURES), lambda i: (0, 0)),
        ],
        out_specs=pl.BlockSpec((TB, OUT_FEATURES), lambda i: (i, 0)),
        compiler_params=pltpu.CompilerParams(
            dimension_semantics=_batch_dim_semantics(),
            vmem_limit_bytes=vmem_bytes,
        ),
        cost_estimate=cost,
    )(x, w_t, b2d)


if __name__ == "__main__":
    key = jax.random.PRNGKey(0)
    k_x1, k_w, k_b, k_x2, k_x3 = jax.random.split(key, 5)

    # Deterministic parameter init mimicking nn.Linear default:
    # uniform(-1/sqrt(in_features), 1/sqrt(in_features)).
    bound = 1.0 / (IN_FEATURES ** 0.5)
    # PyTorch weight is (out, in); store transposed (in, out) for the kernel.
    w_t = jax.random.uniform(
        k_w, (IN_FEATURES, OUT_FEATURES), jnp.float32, -bound, bound
    )
    b = jax.random.uniform(k_b, (OUT_FEATURES,), jnp.float32, -bound, bound)

    def reference(x):
        return jax.nn.softmax(x @ w_t + b, axis=1)

    # 1) small batch that exactly fills the 8-row sublane granule.
    B1 = 8
    x1 = jax.random.normal(k_x1, (B1, IN_FEATURES), jnp.float32)
    out1 = classification_forward(x1, w_t, b)
    jax.block_until_ready(out1)
    ref1 = reference(x1)
    assert out1.shape == (B1, OUT_FEATURES)
    assert jnp.allclose(out1, ref1, atol=1e-5, rtol=1e-5)
    assert jnp.allclose(jnp.sum(out1, axis=1), jnp.ones((B1,)), atol=1e-5)

    # 2) ragged batch (not a multiple of 8): exercises the masked last block
    #    (rows >= B must not be written) with NO wrapper-side padding.
    B2 = 13
    x2 = jax.random.normal(k_x2, (B2, IN_FEATURES), jnp.float32)
    out2 = classification_forward(x2, w_t, b)
    jax.block_until_ready(out2)
    ref2 = reference(x2)
    assert out2.shape == (B2, OUT_FEATURES)
    assert jnp.allclose(out2, ref2, atol=1e-5, rtol=1e-5)
    assert jnp.allclose(jnp.sum(out2, axis=1), jnp.ones((B2,)), atol=1e-5)

    # 3) multi-tile grid with a ragged final tile (small block_b for testing):
    #    exercises the Buffered(3) pipelined path + masked final writeback.
    B3 = 130
    x3 = jax.random.normal(k_x3, (B3, IN_FEATURES), jnp.float32)
    out3 = classification_forward(x3, w_t, b, block_b=64)
    jax.block_until_ready(out3)
    ref3 = reference(x3)
    assert out3.shape == (B3, OUT_FEATURES)
    assert jnp.allclose(out3, ref3, atol=1e-5, rtol=1e-5)
    assert jnp.allclose(jnp.sum(out3, axis=1), jnp.ones((B3,)), atol=1e-5)

    print("KERNEL_OK")
</pallas_src>

<mosaic_0001>
module attributes {stable_mosaic.version = 11 : i64} {
  func.func @_classification_kernel(%arg0: i32, %arg1: memref<8x1024xf32, #tpu.memory_space<vmem>>, %arg2: memref<1024x2xf32, #tpu.memory_space<vmem>>, %arg3: memref<1x2xf32, #tpu.memory_space<vmem>>, %arg4: memref<8x2xf32, #tpu.memory_space<vmem>>) attributes {dimension_semantics = [#tpu.dimension_semantics<parallel>], iteration_bounds = array<i64: 1>, scalar_prefetch = 0 : i64, scratch_operands = 0 : i64, tpu.core_type = #tpu.core_type<tc>, window_params = [{transform_indices = @transform_0, window_bounds = array<i64: 8, 1024>}, {pipeline_mode = #tpu.pipeline_mode<synchronous>, transform_indices = @transform_1, window_bounds = array<i64: 1024, 2>}, {pipeline_mode = #tpu.pipeline_mode<synchronous>, transform_indices = @transform_2, window_bounds = array<i64: 1, 2>}, {transform_indices = @transform_3, window_bounds = array<i64: 8, 2>}]} {
    %c0 = arith.constant 0 : index
    %c0_0 = arith.constant 0 : index
    %0 = vector.load %arg1[%c0, %c0_0] : memref<8x1024xf32, #tpu.memory_space<vmem>>, vector<8x1024xf32>
    %c0_1 = arith.constant 0 : index
    %c0_2 = arith.constant 0 : index
    %1 = vector.load %arg2[%c0_1, %c0_2] : memref<1024x2xf32, #tpu.memory_space<vmem>>, vector<1024x2xf32>
    %cst = arith.constant dense<0.000000e+00> : vector<8x2xf32>
    %2 = tpu.matmul %0, %1, %cst {dimension_numbers = #tpu.dot_dimension_numbers<[1], [0], [0], [1], [0, 0, 1, 1], [], []>} : vector<8x1024xf32>, vector<1024x2xf32>, vector<8x2xf32> -> vector<8x2xf32>
    %c0_3 = arith.constant 0 : index
    %c0_4 = arith.constant 0 : index
    %3 = vector.load %arg3[%c0_3, %c0_4] : memref<1x2xf32, #tpu.memory_space<vmem>>, vector<1x2xf32>
    %4 = vector.broadcast %3 : vector<1x2xf32> to vector<8x2xf32>
    %5 = arith.addf %2, %4 : vector<8x2xf32>
    %cst_5 = arith.constant dense<0xFF800000> : vector<8xf32>
    %6 = vector.multi_reduction <maximumf>, %5, %cst_5 [1] : vector<8x2xf32> to vector<8xf32>
    %7 = vector.shape_cast %6 : vector<8xf32> to vector<8x1xf32>
    %8 = vector.broadcast %7 : vector<8x1xf32> to vector<8x2xf32>
    %9 = arith.subf %5, %8 : vector<8x2xf32>
    %10 = math.exp %9 : vector<8x2xf32>
    %cst_6 = arith.constant dense<0.000000e+00> : vector<8xf32>
    %11 = vector.multi_reduction <add>, %10, %cst_6 [1] : vector<8x2xf32> to vector<8xf32>
    %12 = vector.shape_cast %11 : vector<8xf32> to vector<8x1xf32>
    %13 = vector.broadcast %12 : vector<8x1xf32> to vector<8x2xf32>
    %14 = arith.divf %10, %13 : vector<8x2xf32>
    %c0_7 = arith.constant 0 : index
    %c0_8 = arith.constant 0 : index
    %15 = vector.load %arg4[%c0_7, %c0_8] : memref<8x2xf32, #tpu.memory_space<vmem>>, vector<8x2xf32>
    tpu.vector_store %arg4[%c0_7, %c0_8], %14 {strides = array<i32>} : memref<8x2xf32, #tpu.memory_space<vmem>>, vector<8x2xf32>,
    return
  }
  func.func @transform_0(%arg0: i32) -> (i32, i32) {
    %c0_i32 = arith.constant 0 : i32
    %c0_i32_0 = arith.constant 0 : i32
    return %arg0, %c0_i32 : i32, i32
  }
  func.func @transform_1(%arg0: i32) -> (i32, i32) {
    %c0_i32 = arith.constant 0 : i32
    %c0_i32_0 = arith.constant 0 : i32
    %c0_i32_1 = arith.constant 0 : i32
    return %c0_i32, %c0_i32_0 : i32, i32
  }
  func.func @transform_2(%arg0: i32) -> (i32, i32) {
    %c0_i32 = arith.constant 0 : i32
    %c0_i32_0 = arith.constant 0 : i32
    %c0_i32_1 = arith.constant 0 : i32
    return %c0_i32, %c0_i32_0 : i32, i32
  }
  func.func @transform_3(%arg0: i32) -> (i32, i32) {
    %c0_i32 = arith.constant 0 : i32
    %c0_i32_0 = arith.constant 0 : i32
    return %arg0, %c0_i32 : i32, i32
  }
}

</mosaic_0001>

<bundles_post_ra>
// kernel: tpu_custom_call.1
= control target key start
LH: loop header
LB: loop body
LE: loop exit
PB: predicated region body
PF: predicated region fallthrough
CT: control target
= control target key end

     0   :  { %vm314_vm0 = vcmask 15360   ;;  %s786_s1 = inlined_call_operand.vmem [shape: f32[1024,2], index: 1, kind: input, shape index: {}]   ;;  %s787_s2 = inlined_call_operand.vmem [shape: f32[1,2], index: 2, kind: input, shape index: {}]   ;;  %s788_s0 = inlined_call_operand.vmem [shape: f32[8,1024], index: 0, kind: input, shape index: {}]   ;;  %s789_s3 = inlined_call_operand.vmem [shape: f32[8,2], index: 3, kind: output, shape index: {}]  }
   0x1   :  { %v69_v0 = vld [vmem:[%s786_s1 + $0x178] sm:$0xff]  ;;  %v68_v2 = vld [vmem:[%s786_s1 + $0x170] sm:$0xff]  ;;  %v67_v6 = vld [vmem:[%s786_s1 + $0x168] sm:$0xff] }
   0x2   :  { %v37_v1 = vld [vmem:[%s786_s1 + $0x78] sm:$0xff]  ;;  %194 = vmatpush.msra.mxu2 %v69_v0  ;;  %v36_v4 = vld [vmem:[%s786_s1 + $0x70] sm:$0xff]  ;;  %v35_v8 = vld [vmem:[%s786_s1 + $0x68] sm:$0xff] }
   0x3   :  { %154 = vmatpush.msra.mxu0 %v37_v1  ;;  %v85_v3 = vld [vmem:[%s786_s1 + $0x1f8] sm:$0xff]  ;;  %v84_v7 = vld [vmem:[%s786_s1 + $0x1f0] sm:$0xff]  ;;  %v83_v10 = vld [vmem:[%s786_s1 + $0x1e8] sm:$0xff] }
   0x4   :  { %v53_v5 = vld [vmem:[%s786_s1 + $0xf8] sm:$0xff]  ;;  %214 = vmatpush.msra.mxu3 %v85_v3  ;;  %195 = vmatpush.msra.mxu2 %v68_v2  ;;  %v52_v9 = vld [vmem:[%s786_s1 + $0xf0] sm:$0xff]  ;;  %v66_v11 = vld [vmem:[%s786_s1 + $0x160] sm:$0xff] }
   0x5   :  { %174 = vmatpush.msra.mxu1 %v53_v5  ;;  %155 = vmatpush.msra.mxu0 %v36_v4  ;;  %v34_v12 = vld [vmem:[%s786_s1 + $0x60] sm:$0xff]  ;;  %v51_v13 = vld [vmem:[%s786_s1 + $0xe8] sm:$0xff]  ;;  %v65_v16 = vld [vmem:[%s786_s1 + $0x158] sm:$0xff] }
   0x6   :  { %215 = vmatpush.msra.mxu3 %v84_v7  ;;  %196 = vmatpush.msra.mxu2 %v67_v6  ;;  %v82_v14 = vld [vmem:[%s786_s1 + $0x1e0] sm:$0xff]  ;;  %v33_v17 = vld [vmem:[%s786_s1 + $0x58] sm:$0xff]  ;;  %v64_v20 = vld [vmem:[%s786_s1 + $0x150] sm:$0xff] }
   0x7   :  { %175 = vmatpush.msra.mxu1 %v52_v9  ;;  %156 = vmatpush.msra.mxu0 %v35_v8  ;;  %v50_v15 = vld [vmem:[%s786_s1 + $0xe0] sm:$0xff]  ;;  %v81_v18 = vld [vmem:[%s786_s1 + $0x1d8] sm:$0xff]  ;;  %v32_v21 = vld [vmem:[%s786_s1 + $0x50] sm:$0xff] }
   0x8   :  { %216 = vmatpush.msra.mxu3 %v83_v10  ;;  %197 = vmatpush.msra.mxu2 %v66_v11  ;;  %v49_v19 = vld [vmem:[%s786_s1 + $0xd8] sm:$0xff]  ;;  %v80_v22 = vld [vmem:[%s786_s1 + $0x1d0] sm:$0xff]  ;;  %v63_v24 = vld [vmem:[%s786_s1 + $0x148] sm:$0xff] }
   0x9   :  { %176 = vmatpush.msra.mxu1 %v51_v13  ;;  %157 = vmatpush.msra.mxu0 %v34_v12  ;;  %v48_v23 = vld [vmem:[%s786_s1 + $0xd0] sm:$0xff]  ;;  %v31_v25 = vld [vmem:[%s786_s1 + $0x48] sm:$0xff]  ;;  %v62_v28 = vld [vmem:[%s786_s1 + $0x140] sm:$0xff] }
   0xa   :  { %217 = vmatpush.msra.mxu3 %v82_v14  ;;  %198 = vmatpush.msra.mxu2 %v65_v16  ;;  %v79_v26 = vld [vmem:[%s786_s1 + $0x1c8] sm:$0xff]  ;;  %v30_v29 = vld [vmem:[%s786_s1 + $0x40] sm:$0xff]  ;;  %v61_v32 = vld [vmem:[%s786_s1 + $0x138] sm:$0xff] }
   0xb   :  { %177 = vmatpush.msra.mxu1 %v50_v15  ;;  %158 = vmatpush.msra.mxu0 %v33_v17  ;;  %v47_v27 = vld [vmem:[%s786_s1 + $0xc8] sm:$0xff]  ;;  %v78_v30 = vld [vmem:[%s786_s1 + $0x1c0] sm:$0xff]  ;;  %v29_v33 = vld [vmem:[%s786_s1 + $0x38] sm:$0xff] }
   0xc   :  { %218 = vmatpush.msra.mxu3 %v81_v18  ;;  %199 = vmatpush.msra.mxu2 %v64_v20  ;;  %v46_v31 = vld [vmem:[%s786_s1 + $0xc0] sm:$0xff]  ;;  %v77_v34 = vld [vmem:[%s786_s1 + $0x1b8] sm:$0xff]  ;;  %v60_v36 = vld [vmem:[%s786_s1 + $0x130] sm:$0xff] }
   0xd   :  { %178 = vmatpush.msra.mxu1 %v49_v19  ;;  %159 = vmatpush.msra.mxu0 %v32_v21  ;;  %v45_v35 = vld [vmem:[%s786_s1 + $0xb8] sm:$0xff]  ;;  %v28_v37 = vld [vmem:[%s786_s1 + $0x30] sm:$0xff]  ;;  %v59_v40 = vld [vmem:[%s786_s1 + $0x128] sm:$0xff] }
   0xe   :  { %219 = vmatpush.msra.mxu3 %v80_v22  ;;  %200 = vmatpush.msra.mxu2 %v63_v24  ;;  %v76_v38 = vld [vmem:[%s786_s1 + $0x1b0] sm:$0xff]  ;;  %v27_v41 = vld [vmem:[%s786_s1 + $0x28] sm:$0xff]  ;;  %v58_v44 = vld [vmem:[%s786_s1 + $0x120] sm:$0xff] }
   0xf   :  { %179 = vmatpush.msra.mxu1 %v48_v23  ;;  %160 = vmatpush.msra.mxu0 %v31_v25  ;;  %v44_v39 = vld [vmem:[%s786_s1 + $0xb0] sm:$0xff]  ;;  %v75_v42 = vld [vmem:[%s786_s1 + $0x1a8] sm:$0xff]  ;;  %v26_v45 = vld [vmem:[%s786_s1 + $0x20] sm:$0xff] }
  0x10   :  { %220 = vmatpush.msra.mxu3 %v79_v26  ;;  %201 = vmatpush.msra.mxu2 %v62_v28  ;;  %v43_v43 = vld [vmem:[%s786_s1 + $0xa8] sm:$0xff]  ;;  %v74_v46 = vld [vmem:[%s786_s1 + $0x1a0] sm:$0xff]  ;;  %v57_v48 = vld [vmem:[%s786_s1 + $0x118] sm:$0xff] }
  0x11   :  { %180 = vmatpush.msra.mxu1 %v47_v27  ;;  %161 = vmatpush.msra.mxu0 %v30_v29  ;;  %v42_v47 = vld [vmem:[%s786_s1 + $0xa0] sm:$0xff]  ;;  %v25_v49 = vld [vmem:[%s786_s1 + $0x18] sm:$0xff]  ;;  %v56_v52 = vld [vmem:[%s786_s1 + $0x110] sm:$0xff] }
  0x12   :  { %221 = vmatpush.msra.mxu3 %v78_v30  ;;  %202 = vmatpush.msra.mxu2 %v61_v32  ;;  %v73_v50 = vld [vmem:[%s786_s1 + $0x198] sm:$0xff]  ;;  %v24_v53 = vld [vmem:[%s786_s1 + $0x10] sm:$0xff]  ;;  %v55_v56 = vld [vmem:[%s786_s1 + $0x108] sm:$0xff] }
  0x13   :  { %181 = vmatpush.msra.mxu1 %v46_v31  ;;  %162 = vmatpush.msra.mxu0 %v29_v33  ;;  %v41_v51 = vld [vmem:[%s786_s1 + $0x98] sm:$0xff]  ;;  %v72_v54 = vld [vmem:[%s786_s1 + $0x190] sm:$0xff]  ;;  %v23_v57 = vld [vmem:[%s786_s1 + $0x8] sm:$0xff] }
  0x14   :  { %222 = vmatpush.msra.mxu3 %v77_v34  ;;  %203 = vmatpush.msra.mxu2 %v60_v36  ;;  %v40_v55 = vld [vmem:[%s786_s1 + $0x90] sm:$0xff]  ;;  %v71_v58 = vld [vmem:[%s786_s1 + $0x188] sm:$0xff]  ;;  %v54_v60 = vld [vmem:[%s786_s1 + $0x100] sm:$0xff] }
  0x15   :  { %182 = vmatpush.msra.mxu1 %v45_v35  ;;  %163 = vmatpush.msra.mxu0 %v28_v37  ;;  %v39_v59 = vld [vmem:[%s786_s1 + $0x88] sm:$0xff]  ;;  %v22_v61 = vld [vmem:[%s786_s1] sm:$0xff]  ;;  %v133_v62 = vld [vmem:[%s786_s1 + $0x378] sm:$0xff] }
  0x16   :  { %223 = vmatpush.msra.mxu3 %v76_v38  ;;  %204 = vmatpush.msra.mxu2 %v59_v40  ;;  %v70_v63 = vld [vmem:[%s786_s1 + $0x180] sm:$0xff]  ;;  %v101_v0 = vld [vmem:[%s786_s1 + $0x278] sm:$0xff]  ;;  %v132_v2 = vld [vmem:[%s786_s1 + $0x370] sm:$0xff] }
  0x17   :  { %183 = vmatpush.msra.mxu1 %v44_v39  ;;  %164 = vmatpush.msra.mxu0 %v27_v41  ;;  %v149_v1 = vld [vmem:[%s786_s1 + $0x3f8] sm:$0xff]  ;;  %v38_v3 = vld [vmem:[%s786_s1 + $0x80] sm:$0xff]  ;;  %v100_v4 = vld [vmem:[%s786_s1 + $0x270] sm:$0xff] }
  0x18   :  { %224 = vmatpush.msra.mxu3 %v75_v42  ;;  %205 = vmatpush.msra.mxu2 %v58_v44  ;;  %v117_v5 = vld [vmem:[%s786_s1 + $0x2f8] sm:$0xff]  ;;  %v131_v6 = vld [vmem:[%s786_s1 + $0x368] sm:$0xff]  ;;  %v148_v7 = vld [vmem:[%s786_s1 + $0x3f0] sm:$0xff] }
  0x19   :  { %184 = vmatpush.msra.mxu1 %v43_v43  ;;  %165 = vmatpush.msra.mxu0 %v26_v45  ;;  %v99_v8 = vld [vmem:[%s786_s1 + $0x268] sm:$0xff]  ;;  %v116_v9 = vld [vmem:[%s786_s1 + $0x2f0] sm:$0xff]  ;;  %v130_v10 = vld [vmem:[%s786_s1 + $0x360] sm:$0xff] }
  0x1a   :  { %225 = vmatpush.msra.mxu3 %v74_v46  ;;  %206 = vmatpush.msra.mxu2 %v57_v48  ;;  %v147_v11 = vld [vmem:[%s786_s1 + $0x3e8] sm:$0xff]  ;;  %v98_v12 = vld [vmem:[%s786_s1 + $0x260] sm:$0xff]  ;;  %v129_v14 = vld [vmem:[%s786_s1 + $0x358] sm:$0xff] }
  0x1b   :  { %185 = vmatpush.msra.mxu1 %v42_v47  ;;  %166 = vmatpush.msra.mxu0 %v25_v49  ;;  %v115_v13 = vld [vmem:[%s786_s1 + $0x2e8] sm:$0xff]  ;;  %v146_v15 = vld [vmem:[%s786_s1 + $0x3e0] sm:$0xff]  ;;  %v97_v16 = vld [vmem:[%s786_s1 + $0x258] sm:$0xff] }
  0x1c   :  { %226 = vmatpush.msra.mxu3 %v73_v50  ;;  %207 = vmatpush.msra.mxu2 %v56_v52  ;;  %v114_v17 = vld [vmem:[%s786_s1 + $0x2e0] sm:$0xff]  ;;  %v128_v18 = vld [vmem:[%s786_s1 + $0x350] sm:$0xff]  ;;  %v145_v19 = vld [vmem:[%s786_s1 + $0x3d8] sm:$0xff] }
  0x1d   :  { %186 = vmatpush.msra.mxu1 %v41_v51  ;;  %167 = vmatpush.msra.mxu0 %v24_v53  ;;  %v96_v20 = vld [vmem:[%s786_s1 + $0x250] sm:$0xff]  ;;  %v113_v21 = vld [vmem:[%s786_s1 + $0x2d8] sm:$0xff]  ;;  %v127_v22 = vld [vmem:[%s786_s1 + $0x348] sm:$0xff] }
  0x1e   :  { %227 = vmatpush.msra.mxu3 %v72_v54  ;;  %208 = vmatpush.msra.mxu2 %v55_v56  ;;  %v144_v23 = vld [vmem:[%s786_s1 + $0x3d0] sm:$0xff]  ;;  %v95_v24 = vld [vmem:[%s786_s1 + $0x248] sm:$0xff]  ;;  %v126_v26 = vld [vmem:[%s786_s1 + $0x340] sm:$0xff] }
  0x1f   :  { %187 = vmatpush.msra.mxu1 %v40_v55  ;;  %168 = vmatpush.msra.mxu0 %v23_v57  ;;  %v112_v25 = vld [vmem:[%s786_s1 + $0x2d0] sm:$0xff]  ;;  %v143_v27 = vld [vmem:[%s786_s1 + $0x3c8] sm:$0xff]  ;;  %v94_v28 = vld [vmem:[%s786_s1 + $0x240] sm:$0xff] }
  0x20   :  { %228 = vmatpush.msra.mxu3 %v71_v58  ;;  %209 = vmatpush.msra.mxu2 %v54_v60  ;;  %v111_v29 = vld [vmem:[%s786_s1 + $0x2c8] sm:$0xff]  ;;  %v125_v30 = vld [vmem:[%s786_s1 + $0x338] sm:$0xff]  ;;  %v142_v31 = vld [vmem:[%s786_s1 + $0x3c0] sm:$0xff] }
  0x21   :  { %188 = vmatpush.msra.mxu1 %v39_v59  ;;  %169 = vmatpush.msra.mxu0 %v22_v61  ;;  %v93_v32 = vld [vmem:[%s786_s1 + $0x238] sm:$0xff]  ;;  %v110_v33 = vld [vmem:[%s786_s1 + $0x2c0] sm:$0xff]  ;;  %v124_v34 = vld [vmem:[%s786_s1 + $0x330] sm:$0xff] }
  0x22   :  { %274 = vmatpush.msrb.mxu2 %v133_v62  ;;  %229 = vmatpush.msra.mxu3 %v70_v63  ;;  %v141_v35 = vld [vmem:[%s786_s1 + $0x3b8] sm:$0xff]  ;;  %v92_v36 = vld [vmem:[%s786_s1 + $0x230] sm:$0xff]  ;;  %v123_v38 = vld [vmem:[%s786_s1 + $0x328] sm:$0xff] }
  0x23   :  { %234 = vmatpush.msrb.mxu0 %v101_v0  ;;  %189 = vmatpush.msra.mxu1 %v38_v3  ;;  %v109_v37 = vld [vmem:[%s786_s1 + $0x2b8] sm:$0xff]  ;;  %v140_v39 = vld [vmem:[%s786_s1 + $0x3b0] sm:$0xff]  ;;  %v91_v40 = vld [vmem:[%s786_s1 + $0x228] sm:$0xff] }
  0x24   :  { %294 = vmatpush.msrb.mxu3 %v149_v1  ;;  %275 = vmatpush.msrb.mxu2 %v132_v2  ;;  %v108_v41 = vld [vmem:[%s786_s1 + $0x2b0] sm:$0xff]  ;;  %v122_v42 = vld [vmem:[%s786_s1 + $0x320] sm:$0xff]  ;;  %v139_v43 = vld [vmem:[%s786_s1 + $0x3a8] sm:$0xff] }
  0x25   :  { %235 = vmatpush.msrb.mxu0 %v100_v4  ;;  %254 = vmatpush.msrb.mxu1 %v117_v5  ;;  %v16_v44 = vld [vmem:[%s788_s0 + $0x10] sm:$0xff]  ;;  %v90_v45 = vld [vmem:[%s786_s1 + $0x220] sm:$0xff]  ;;  %v107_v46 = vld [vmem:[%s786_s1 + $0x2a8] sm:$0xff] }
  0x26   :  { %276 = vmatpush.msrb.mxu2 %v131_v6  ;;  %295 = vmatpush.msrb.mxu3 %v148_v7  ;;  %v121_v47 = vld [vmem:[%s786_s1 + $0x318] sm:$0xff]  ;;  %v138_v48 = vld [vmem:[%s786_s1 + $0x3a0] sm:$0xff]  ;;  %v120_v53 = vld [vmem:[%s786_s1 + $0x310] sm:$0xff] }
  0x27   :  { %236 = vmatpush.msrb.mxu0 %v99_v8  ;;  %255 = vmatpush.msrb.mxu1 %v116_v9  ;;  %v14_v49 = vld [vmem:[%s788_s0] sm:$0xff]  ;;  %v17_v50 = vld [vmem:[%s788_s0 + $0x18] sm:$0xff]  ;;  %v15_v55 = vld [vmem:[%s788_s0 + $0x8] sm:$0xff] }
  0x28   :  { %277 = vmatpush.msrb.mxu2 %v130_v10  ;;  %296 = vmatpush.msrb.mxu3 %v147_v11  ;;  %v89_v51 = vld [vmem:[%s786_s1 + $0x218] sm:$0xff]  ;;  %v106_v52 = vld [vmem:[%s786_s1 + $0x2a0] sm:$0xff]  ;;  %v88_v56 = vld [vmem:[%s786_s1 + $0x210] sm:$0xff] }
  0x29   :  { %237 = vmatpush.msrb.mxu0 %v98_v12  ;;  %256 = vmatpush.msrb.mxu1 %v115_v13  ;;  %v137_v54 = vld [vmem:[%s786_s1 + $0x398] sm:$0xff]  ;;  %v119_v58 = vld [vmem:[%s786_s1 + $0x308] sm:$0xff]  ;;  %v136_v59 = vld [vmem:[%s786_s1 + $0x390] sm:$0xff] }
  0x2a   :  { %278 = vmatpush.msrb.mxu2 %v129_v14  ;;  %297 = vmatpush.msrb.mxu3 %v146_v15  ;;  %v105_v57 = vld [vmem:[%s786_s1 + $0x298] sm:$0xff]  ;;  %v87_v60 = vld [vmem:[%s786_s1 + $0x208] sm:$0xff]  ;;  %v104_v61 = vld [vmem:[%s786_s1 + $0x290] sm:$0xff] }
  0x2b   :  { %238 = vmatpush.msrb.mxu0 %v97_v16  ;;  %257 = vmatpush.msrb.mxu1 %v114_v17  ;;  %v118_v62 = vld [vmem:[%s786_s1 + $0x300] sm:$0xff]  ;;  %v135_v63 = vld [vmem:[%s786_s1 + $0x388] sm:$0xff]  ;;  %v20_v0 = vld [vmem:[%s788_s0 + $0x30] sm:$0xff] }
  0x2c   :  { %279 = vmatpush.msrb.mxu2 %v128_v18  ;;  %298 = vmatpush.msrb.mxu3 %v145_v19  ;;  %v86_v1 = vld [vmem:[%s786_s1 + $0x200] sm:$0xff]  ;;  %v103_v2 = vld [vmem:[%s786_s1 + $0x288] sm:$0xff]  ;;  %v21_v5 = vld [vmem:[%s788_s0 + $0x38] sm:$0xff] }
  0x2d   :  { %239 = vmatpush.msrb.mxu0 %v96_v20  ;;  %258 = vmatpush.msrb.mxu1 %v113_v21  ;;  %v134_v3 = vld [vmem:[%s786_s1 + $0x380] sm:$0xff]  ;;  %v19_v7 = vld [vmem:[%s788_s0 + $0x28] sm:$0xff] }
  0x2e   :  { %280 = vmatpush.msrb.mxu2 %v127_v22  ;;  %299 = vmatpush.msrb.mxu3 %v144_v23  ;;  %v18_v4 = vld [vmem:[%s788_s0 + $0x20] sm:$0xff] }
  0x2f   :  { %240 = vmatpush.msrb.mxu0 %v95_v24  ;;  %259 = vmatpush.msrb.mxu1 %v112_v25  ;;  %v102_v6 = vld [vmem:[%s786_s1 + $0x280] sm:$0xff] }
  0x30   :  { %281 = vmatpush.msrb.mxu2 %v126_v26  ;;  %300 = vmatpush.msrb.mxu3 %v143_v27  ;;  %v344_v8 = vld [vmem:[%s787_s2] ss:$0 sm:$0xff] }
  0x31   :  { %241 = vmatpush.msrb.mxu0 %v94_v28  ;;  %260 = vmatpush.msrb.mxu1 %v111_v29 }
  0x32   :  { %282 = vmatpush.msrb.mxu2 %v125_v30  ;;  %301 = vmatpush.msrb.mxu3 %v142_v31 }
  0x33   :  { %242 = vmatpush.msrb.mxu0 %v93_v32  ;;  %261 = vmatpush.msrb.mxu1 %v110_v33 }
  0x34   :  { %283 = vmatpush.msrb.mxu2 %v124_v34  ;;  %302 = vmatpush.msrb.mxu3 %v141_v35 }
  0x35   :  { %243 = vmatpush.msrb.mxu0 %v92_v36  ;;  %262 = vmatpush.msrb.mxu1 %v109_v37 }
  0x36   :  { %284 = vmatpush.msrb.mxu2 %v123_v38  ;;  %303 = vmatpush.msrb.mxu3 %v140_v39 }
  0x37   :  { %244 = vmatpush.msrb.mxu0 %v91_v40  ;;  %263 = vmatpush.msrb.mxu1 %v108_v41 }
  0x38   :  { %285 = vmatpush.msrb.mxu2 %v122_v42  ;;  %304 = vmatpush.msrb.mxu3 %v139_v43 }
  0x39   :  { %210 = vmatmul.f32.vlgmr.msra.gmra.mxu2 %v16_v44  ;;  %245 = vmatpush.msrb.mxu0 %v90_v45 }
  0x3a   :  { %264 = vmatpush.msrb.mxu1 %v107_v46  ;;  %286 = vmatpush.msrb.mxu2 %v121_v47 }
  0x3b   :  { %305 = vmatpush.msrb.mxu3 %v138_v48  ;;  %170 = vmatmul.f32.vlgmr.msra.gmra.mxu0 %v14_v49 }
  0x3c   :  { %230 = vmatmul.f32.vlgmr.msra.gmra.mxu3 %v17_v50  ;;  %246 = vmatpush.msrb.mxu0 %v89_v51 }
  0x3d   :  { %265 = vmatpush.msrb.mxu1 %v106_v52  ;;  %287 = vmatpush.msrb.mxu2 %v120_v53 }
  0x3e   :  { %306 = vmatpush.msrb.mxu3 %v137_v54  ;;  %190 = vmatmul.f32.vlgmr.msra.gmra.mxu1 %v15_v55 }
  0x3f   :  { %247 = vmatpush.msrb.mxu0 %v88_v56  ;;  %266 = vmatpush.msrb.mxu1 %v105_v57 }
  0x40   :  { %288 = vmatpush.msrb.mxu2 %v119_v58  ;;  %307 = vmatpush.msrb.mxu3 %v136_v59 }
  0x41   :  { %248 = vmatpush.msrb.mxu0 %v87_v60  ;;  %267 = vmatpush.msrb.mxu1 %v104_v61 }
  0x42   :  { %289 = vmatpush.msrb.mxu2 %v118_v62  ;;  %308 = vmatpush.msrb.mxu3 %v135_v63 }
  0x43   :  { %290 = vmatmul.f32.vlgmr.msrb.gmra.mxu2 %v20_v0  ;;  %249 = vmatpush.msrb.mxu0 %v86_v1 }
  0x44   :  { %268 = vmatpush.msrb.mxu1 %v103_v2  ;;  %309 = vmatpush.msrb.mxu3 %v134_v3 }
  0x45   :  { %250 = vmatmul.f32.vlgmr.msrb.gmra.mxu0 %v18_v4  ;;  %310 = vmatmul.f32.vlgmr.msrb.gmra.mxu3 %v21_v5 }
  0x46   :  { %269 = vmatpush.msrb.mxu1 %v102_v6 }
  0x47   :  { %270 = vmatmul.f32.vlgmr.msrb.gmra.mxu1 %v19_v7 }
  0xb8   :  { %v171_v9 = vpop.f32.mrf.mxu0 }
  0xb9   :  { %v172_v10 = vadd.f32 %v344_v8, %v171_v9 }
  0xbb   :  { %v191_v11 = vpop.f32.mrf.mxu1 }
  0xbc   :  { %v192_v12 = vadd.f32 %v191_v11, %v172_v10  ;;  %v211_v13 = vpop.f32.mrf.mxu2 }
  0xbe   :  { %v212_v14 = vadd.f32 %v211_v13, %v192_v12 }
  0xbf   :  { %v231_v15 = vpop.f32.mrf.mxu3 }
  0xc0   :  { %v232_v16 = vadd.f32 %v231_v15, %v212_v14 }
  0xc2   :  { %v251_v17 = vpop.f32.mrf.mxu0 }
  0xc3   :  { %v252_v18 = vadd.f32 %v251_v17, %v232_v16 }
  0xc4   :  { %v271_v19 = vpop.f32.mrf.mxu1 }
  0xc5   :  { %v272_v20 = vadd.f32 %v271_v19, %v252_v18 }
  0xc6   :  { %v291_v21 = vpop.f32.mrf.mxu2 }
  0xc7   :  { %v292_v22 = vadd.f32 %v291_v21, %v272_v20 }
  0xc8   :  { %v311_v23 = vpop.f32.mrf.mxu3 }
  0xc9   :  { %v312_v24 = vadd.f32 %v311_v23, %v292_v22 }
  0xcb   :  { %v315_v25 = vsel %vm314_vm0, %v312_v24, -inf }
  0xcc   :  { %316 = vmax.xlane.f32.xlu0 %v315_v25 }
 0x13f   :  { %v317_v26 = vpop.xlane.xlu0 %316 }
 0x140   :  { %v318_v27 = vsub.f32 %v312_v24, %v317_v26 }
 0x142   :  { %v319_v28 = vmul.f32 1.442695, %v318_v27 }
 0x144   :  { %345 = vpow2.f32 %v319_v28 }
 0x14a   :  { %v346_v29 = vpop.eup %345 }
 0x14b   :  { %v321_v30 = vsel %vm314_vm0, %v346_v29, 0.0 }
 0x14c   :  { %322 = vadd.xlane.f32.xlu0 %v321_v30 }
 0x1bf   :  { %v323_v31 = vpop.xlane.xlu0 %322 }
 0x1c0   :  { %347 = vrcp.f32 %v323_v31  ;;  %v335_v35 = vand.u32 2147483648, %v323_v31  ;;  %v333_v37 = vand.u32 2147483647, %v323_v31  ;;  %vm329_vm2 = vweird.f32 %v323_v31 }
 0x1c2   :  { %v336_v39 = vor.u32 1.1754944e-38, %v335_v35  ;;  %vm334_vm4 = vcmp.eq.f32.partialorder %v333_v37, 8.507059e+37 }
 0x1c6   :  { %v348_v32 = vpop.eup %347 }
 0x1c7   :  { %v325_v33 = vmul.f32 %v348_v32, %v323_v31  ;;  %vm330_vm1 = vweird.f32 %v348_v32 }
 0x1c8   :  { %vm331_vm3 = vmor %vm329_vm2, %vm330_vm1 }
 0x1c9   :  { %v326_v34 = vsub.f32 1.0, %v325_v33 }
 0x1cb   :  { %v327_v36 = vmul.f32 %v348_v32, %v326_v34 }
 0x1cd   :  { %v328_v38 = vadd.f32 %v348_v32, %v327_v36 }
 0x1cf   :  { %v332_v40 = vsel %vm331_vm3, %v348_v32, %v328_v38 }
 0x1d0   :  { %v337_v41 = vsel %vm334_vm4, %v336_v39, %v332_v40 }
 0x1d1   :  { %v338_v42 = vmul.f32 %v346_v29, %v337_v41 }
 0x1d3   :  { %339 = vst.msk [vmem:[%s789_s3] sm:$0xff] %vm314_vm0, %v338_v42 }

</bundles_post_ra>
